<compile_context>
chip_gen: v7x
topology: tpu7x:2x2x1
jax: 0.10.0
libtpu: 0.0.40
codegen_flags: <defaults>
</compile_context>

<pallas_src>
import jax
import jax.numpy as jnp
from jax.experimental import pallas as pl
from jax.experimental.pallas import tpu as pltpu

LN_EPS = 1e-5  # nn.LayerNorm default


def _round_up(a: int, b: int) -> int:
    return (a + b - 1) // b * b


def residual_ff_kernel(x_ref, w1_ref, b1_ref, w2_ref, b2_ref, g_ref, beta_ref, o_ref):
    # Residual / LayerNorm path in f32.
    x_f32 = x_ref[...].astype(jnp.float32)                                  # (tm, D)

    # sublayer: Linear -> ReLU -> Linear.  MXU matmuls run with bf16 operands
    # (native MXU rate on v5e/v6e/v7x) and f32 accumulation.
    x_mm = x_ref[...].astype(w1_ref.dtype)
    h = jnp.dot(x_mm, w1_ref[...], preferred_element_type=jnp.float32) + b1_ref[...]
    h = jnp.maximum(h, 0.0)
    ff = (jnp.dot(h.astype(w2_ref.dtype), w2_ref[...],
                  preferred_element_type=jnp.float32) + b2_ref[...])

    # residual add; Dropout(p=0.1) is identity in eval mode.
    # TODO(synk): training-mode dropout (pltpu.prng_random_bits mask) not implemented.
    y = x_f32 + ff

    # LayerNorm over last dim (biased variance, like torch), all in f32.
    mean = jnp.mean(y, axis=-1, keepdims=True)
    var = jnp.mean((y - mean) ** 2, axis=-1, keepdims=True)
    normed = (y - mean) * jax.lax.rsqrt(var + LN_EPS)
    o_ref[...] = (normed * g_ref[...] + beta_ref[...]).astype(o_ref.dtype)


def residual_ff(x, w1, b1, w2, b2, gamma, beta, *, tile_m=256,
                compute_dtype=jnp.bfloat16):
    """x: (B, S, D). Returns LayerNorm(x + FF(x)) with FF = relu(x@w1 + b1) @ w2 + b2."""
    B, S, D = x.shape
    F = w1.shape[1]
    M = B * S
    x2 = x.reshape(M, D)

    # --- tile-size selection -------------------------------------------------
    # bf16 I/O needs a (16,128) minimum sublane tile; f32 needs (8,128).
    min_sublane = 16 if x.dtype == jnp.bfloat16 else 8
    tm = max(min_sublane, min(int(tile_m), _round_up(M, min_sublane)))
    tm = _round_up(tm, min_sublane)

    # Pad M up to a multiple of tm so no remainder rows are dropped and every
    # MXU pass is full-height.  Padded (zero) rows are harmless for LayerNorm
    # (eps > 0, no NaNs) and are sliced off below.
    Mp = _round_up(M, tm)
    if Mp != M:
        x2 = jnp.pad(x2, ((0, Mp - M), (0, 0)))

    # --- operand dtypes ------------------------------------------------------
    # Weights in bf16: halves the resident (double-buffered) weight footprint in
    # VMEM and runs the MXU at its native bf16 rate on all generations.
    w1c = w1.astype(compute_dtype)
    w2c = w2.astype(compute_dtype)
    b1_2 = b1.reshape(1, F).astype(jnp.float32)
    b2_2 = b2.reshape(1, D).astype(jnp.float32)
    g_2 = gamma.reshape(1, D).astype(jnp.float32)
    be_2 = beta.reshape(1, D).astype(jnp.float32)

    # --- explicit VMEM budget (weights + double-buffered I/O + f32 scratch) --
    w_bytes = jnp.dtype(compute_dtype).itemsize
    x_bytes = jnp.dtype(x.dtype).itemsize
    footprint = (
        2 * (D * F + F * D) * w_bytes          # resident weights, double-buffered
        + 2 * (F + 3 * D) * 4                  # bias / gamma / beta vectors
        + 2 * tm * D * x_bytes * 2             # x tile + out tile, double-buffered
        + tm * F * 4                           # f32 hidden activation
        + 4 * tm * D * 4                       # f32 temporaries (y, normed, ...)
    )
    vmem_limit = min(max(2 * footprint + (4 << 20), 16 << 20), 100 << 20)

    # NOTE: for real model shapes D is a multiple of 128 (lane-dense stores).
    # The tiny D=32 test below uses masked partial stores, which is fine at
    # this scale.

    out2 = pl.pallas_call(
        residual_ff_kernel,
        out_shape=jax.ShapeDtypeStruct((Mp, D), x.dtype),
        grid_spec=pltpu.PrefetchScalarGridSpec(
            num_scalar_prefetch=0,
            grid=(Mp // tm,),
            in_specs=[
                pl.BlockSpec((tm, D), lambda i: (i, 0)),   # x rows
                pl.BlockSpec((D, F), lambda i: (0, 0)),    # w1 (resident, bf16)
                pl.BlockSpec((1, F), lambda i: (0, 0)),    # b1
                pl.BlockSpec((F, D), lambda i: (0, 0)),    # w2 (resident, bf16)
                pl.BlockSpec((1, D), lambda i: (0, 0)),    # b2
                pl.BlockSpec((1, D), lambda i: (0, 0)),    # gamma
                pl.BlockSpec((1, D), lambda i: (0, 0)),    # beta
            ],
            out_specs=pl.BlockSpec((tm, D), lambda i: (i, 0)),
        ),
        compiler_params=pltpu.CompilerParams(
            dimension_semantics=("parallel",),
            vmem_limit_bytes=int(vmem_limit),
        ),
    )(x2, w1c, b1_2, w2c, b2_2, g_2, be_2)

    return out2[:M].reshape(B, S, D)


def residual_ff_reference(x, w1, b1, w2, b2, gamma, beta, *, mm_dtype=None):
    """Pure-JAX reference. If mm_dtype is given, matmul operands are cast to it
    (precision-matched to the kernel); otherwise full f32."""
    if mm_dtype is not None:
        h = jnp.dot(x.astype(mm_dtype), w1.astype(mm_dtype),
                    preferred_element_type=jnp.float32) + b1
        h = jnp.maximum(h, 0.0)
        ff = jnp.dot(h.astype(mm_dtype), w2.astype(mm_dtype),
                     preferred_element_type=jnp.float32) + b2
    else:
        ff = jnp.maximum(x @ w1 + b1, 0.0) @ w2 + b2
    y = x + ff
    mean = jnp.mean(y, axis=-1, keepdims=True)
    var = jnp.mean((y - mean) ** 2, axis=-1, keepdims=True)
    return (y - mean) / jnp.sqrt(var + LN_EPS) * gamma + beta


if __name__ == "__main__":
    B, S, D, F = 2, 8, 32, 64  # batch, seq, model dim, feed-forward dim

    key = jax.random.PRNGKey(0)
    kx, k1, k2, k3, k4 = jax.random.split(key, 5)

    x = jax.random.normal(kx, (B, S, D), dtype=jnp.float32)
    w1 = jax.random.normal(k1, (D, F), dtype=jnp.float32) * 0.1
    b1 = jax.random.normal(k2, (F,), dtype=jnp.float32) * 0.1
    w2 = jax.random.normal(k3, (F, D), dtype=jnp.float32) * 0.1
    b2 = jax.random.normal(k4, (D,), dtype=jnp.float32) * 0.1
    gamma = jnp.ones((D,), dtype=jnp.float32)   # nn.LayerNorm default init
    beta = jnp.zeros((D,), dtype=jnp.float32)

    out = residual_ff(x, w1, b1, w2, b2, gamma, beta)
    out = jax.block_until_ready(out)
    assert out.shape == (B, S, D)
    assert bool(jnp.all(jnp.isfinite(out)))

    # Precision-matched reference (bf16 matmul operands, f32 accumulation): tight check.
    ref_bf16 = residual_ff_reference(x, w1, b1, w2, b2, gamma, beta,
                                     mm_dtype=jnp.bfloat16)
    assert jnp.allclose(out, ref_bf16, atol=2e-3, rtol=2e-3)

    # Full-f32 reference: loose check that the overall semantics are right.
    ref_f32 = residual_ff_reference(x, w1, b1, w2, b2, gamma, beta)
    assert jnp.allclose(out, ref_f32, atol=5e-2, rtol=5e-2)

    print("KERNEL_OK")
</pallas_src>

<mosaic_0001>
module attributes {stable_mosaic.version = 11 : i64} {
  func.func @residual_ff_kernel(%arg0: i32, %arg1: memref<16x32xf32, #tpu.memory_space<vmem>>, %arg2: memref<32x64xbf16, #tpu.memory_space<vmem>>, %arg3: memref<1x64xf32, #tpu.memory_space<vmem>>, %arg4: memref<64x32xbf16, #tpu.memory_space<vmem>>, %arg5: memref<1x32xf32, #tpu.memory_space<vmem>>, %arg6: memref<1x32xf32, #tpu.memory_space<vmem>>, %arg7: memref<1x32xf32, #tpu.memory_space<vmem>>, %arg8: memref<16x32xf32, #tpu.memory_space<vmem>>) attributes {dimension_semantics = [#tpu.dimension_semantics<parallel>], iteration_bounds = array<i64: 1>, scalar_prefetch = 0 : i64, scratch_operands = 0 : i64, tpu.core_type = #tpu.core_type<tc>, window_params = [{transform_indices = @transform_0, window_bounds = array<i64: 16, 32>}, {pipeline_mode = #tpu.pipeline_mode<synchronous>, transform_indices = @transform_1, window_bounds = array<i64: 32, 64>}, {pipeline_mode = #tpu.pipeline_mode<synchronous>, transform_indices = @transform_2, window_bounds = array<i64: 1, 64>}, {pipeline_mode = #tpu.pipeline_mode<synchronous>, transform_indices = @transform_3, window_bounds = array<i64: 64, 32>}, {pipeline_mode = #tpu.pipeline_mode<synchronous>, transform_indices = @transform_4, window_bounds = array<i64: 1, 32>}, {pipeline_mode = #tpu.pipeline_mode<synchronous>, transform_indices = @transform_5, window_bounds = array<i64: 1, 32>}, {pipeline_mode = #tpu.pipeline_mode<synchronous>, transform_indices = @transform_6, window_bounds = array<i64: 1, 32>}, {transform_indices = @transform_7, window_bounds = array<i64: 16, 32>}]} {
    %c0 = arith.constant 0 : index
    %c0_0 = arith.constant 0 : index
    %0 = vector.load %arg1[%c0, %c0_0] : memref<16x32xf32, #tpu.memory_space<vmem>>, vector<16x32xf32>
    %c0_1 = arith.constant 0 : index
    %c0_2 = arith.constant 0 : index
    %1 = vector.load %arg1[%c0_1, %c0_2] : memref<16x32xf32, #tpu.memory_space<vmem>>, vector<16x32xf32>
    %2 = arith.truncf %1 : vector<16x32xf32> to vector<16x32xbf16>
    %c0_3 = arith.constant 0 : index
    %c0_4 = arith.constant 0 : index
    %3 = vector.load %arg2[%c0_3, %c0_4] : memref<32x64xbf16, #tpu.memory_space<vmem>>, vector<32x64xbf16>
    %cst = arith.constant dense<0.000000e+00> : vector<16x64xf32>
    %4 = tpu.matmul %2, %3, %cst {dimension_numbers = #tpu.dot_dimension_numbers<[1], [0], [0], [1], [0, 0, 1, 1], [], []>} : vector<16x32xbf16>, vector<32x64xbf16>, vector<16x64xf32> -> vector<16x64xf32>
    %c0_5 = arith.constant 0 : index
    %c0_6 = arith.constant 0 : index
    %5 = vector.load %arg3[%c0_5, %c0_6] : memref<1x64xf32, #tpu.memory_space<vmem>>, vector<1x64xf32>
    %6 = vector.broadcast %5 : vector<1x64xf32> to vector<16x64xf32>
    %7 = arith.addf %4, %6 : vector<16x64xf32>
    %cst_7 = arith.constant 0.000000e+00 : f32
    %8 = vector.broadcast %cst_7 : f32 to vector<16x64xf32>
    %9 = arith.maximumf %7, %8 : vector<16x64xf32>
    %10 = arith.truncf %9 : vector<16x64xf32> to vector<16x64xbf16>
    %c0_8 = arith.constant 0 : index
    %c0_9 = arith.constant 0 : index
    %11 = vector.load %arg4[%c0_8, %c0_9] : memref<64x32xbf16, #tpu.memory_space<vmem>>, vector<64x32xbf16>
    %cst_10 = arith.constant dense<0.000000e+00> : vector<16x32xf32>
    %12 = tpu.matmul %10, %11, %cst_10 {dimension_numbers = #tpu.dot_dimension_numbers<[1], [0], [0], [1], [0, 0, 1, 1], [], []>} : vector<16x64xbf16>, vector<64x32xbf16>, vector<16x32xf32> -> vector<16x32xf32>
    %c0_11 = arith.constant 0 : index
    %c0_12 = arith.constant 0 : index
    %13 = vector.load %arg5[%c0_11, %c0_12] : memref<1x32xf32, #tpu.memory_space<vmem>>, vector<1x32xf32>
    %14 = vector.broadcast %13 : vector<1x32xf32> to vector<16x32xf32>
    %15 = arith.addf %12, %14 : vector<16x32xf32>
    %16 = arith.addf %0, %15 : vector<16x32xf32>
    %cst_13 = arith.constant dense<0.000000e+00> : vector<16xf32>
    %17 = vector.multi_reduction <add>, %16, %cst_13 [1] : vector<16x32xf32> to vector<16xf32>
    %18 = vector.shape_cast %17 : vector<16xf32> to vector<16x1xf32>
    %cst_14 = arith.constant 3.200000e+01 : f32
    %19 = vector.broadcast %cst_14 : f32 to vector<16x1xf32>
    %20 = arith.divf %18, %19 : vector<16x1xf32>
    %21 = vector.broadcast %20 : vector<16x1xf32> to vector<16x32xf32>
    %22 = arith.subf %16, %21 : vector<16x32xf32>
    %23 = arith.mulf %22, %22 : vector<16x32xf32>
    %cst_15 = arith.constant dense<0.000000e+00> : vector<16xf32>
    %24 = vector.multi_reduction <add>, %23, %cst_15 [1] : vector<16x32xf32> to vector<16xf32>
    %25 = vector.shape_cast %24 : vector<16xf32> to vector<16x1xf32>
    %cst_16 = arith.constant 3.200000e+01 : f32
    %26 = vector.broadcast %cst_16 : f32 to vector<16x1xf32>
    %27 = arith.divf %25, %26 : vector<16x1xf32>
    %28 = vector.broadcast %20 : vector<16x1xf32> to vector<16x32xf32>
    %29 = arith.subf %16, %28 : vector<16x32xf32>
    %cst_17 = arith.constant 9.99999974E-6 : f32
    %30 = vector.broadcast %cst_17 : f32 to vector<16x1xf32>
    %31 = arith.addf %27, %30 : vector<16x1xf32>
    %32 = math.rsqrt %31 : vector<16x1xf32>
    %33 = vector.broadcast %32 : vector<16x1xf32> to vector<16x32xf32>
    %34 = arith.mulf %29, %33 : vector<16x32xf32>
    %c0_18 = arith.constant 0 : index
    %c0_19 = arith.constant 0 : index
    %35 = vector.load %arg6[%c0_18, %c0_19] : memref<1x32xf32, #tpu.memory_space<vmem>>, vector<1x32xf32>
    %36 = vector.broadcast %35 : vector<1x32xf32> to vector<16x32xf32>
    %37 = arith.mulf %34, %36 : vector<16x32xf32>
    %c0_20 = arith.constant 0 : index
    %c0_21 = arith.constant 0 : index
    %38 = vector.load %arg7[%c0_20, %c0_21] : memref<1x32xf32, #tpu.memory_space<vmem>>, vector<1x32xf32>
    %39 = vector.broadcast %38 : vector<1x32xf32> to vector<16x32xf32>
    %40 = arith.addf %37, %39 : vector<16x32xf32>
    %c0_22 = arith.constant 0 : index
    %c0_23 = arith.constant 0 : index
    %41 = vector.load %arg8[%c0_22, %c0_23] : memref<16x32xf32, #tpu.memory_space<vmem>>, vector<16x32xf32>
    tpu.vector_store %arg8[%c0_22, %c0_23], %40 {strides = array<i32>} : memref<16x32xf32, #tpu.memory_space<vmem>>, vector<16x32xf32>,
    return
  }
  func.func @transform_0(%arg0: i32) -> (i32, i32) {
    %c0_i32 = arith.constant 0 : i32
    %c0_i32_0 = arith.constant 0 : i32
    return %arg0, %c0_i32 : i32, i32
  }
  func.func @transform_1(%arg0: i32) -> (i32, i32) {
    %c0_i32 = arith.constant 0 : i32
    %c0_i32_0 = arith.constant 0 : i32
    %c0_i32_1 = arith.constant 0 : i32
    return %c0_i32, %c0_i32_0 : i32, i32
  }
  func.func @transform_2(%arg0: i32) -> (i32, i32) {
    %c0_i32 = arith.constant 0 : i32
    %c0_i32_0 = arith.constant 0 : i32
    %c0_i32_1 = arith.constant 0 : i32
    return %c0_i32, %c0_i32_0 : i32, i32
  }
  func.func @transform_3(%arg0: i32) -> (i32, i32) {
    %c0_i32 = arith.constant 0 : i32
    %c0_i32_0 = arith.constant 0 : i32
    %c0_i32_1 = arith.constant 0 : i32
    return %c0_i32, %c0_i32_0 : i32, i32
  }
  func.func @transform_4(%arg0: i32) -> (i32, i32) {
    %c0_i32 = arith.constant 0 : i32
    %c0_i32_0 = arith.constant 0 : i32
    %c0_i32_1 = arith.constant 0 : i32
    return %c0_i32, %c0_i32_0 : i32, i32
  }
  func.func @transform_5(%arg0: i32) -> (i32, i32) {
    %c0_i32 = arith.constant 0 : i32
    %c0_i32_0 = arith.constant 0 : i32
    %c0_i32_1 = arith.constant 0 : i32
    return %c0_i32, %c0_i32_0 : i32, i32
  }
  func.func @transform_6(%arg0: i32) -> (i32, i32) {
    %c0_i32 = arith.constant 0 : i32
    %c0_i32_0 = arith.constant 0 : i32
    %c0_i32_1 = arith.constant 0 : i32
    return %c0_i32, %c0_i32_0 : i32, i32
  }
  func.func @transform_7(%arg0: i32) -> (i32, i32) {
    %c0_i32 = arith.constant 0 : i32
    %c0_i32_0 = arith.constant 0 : i32
    return %arg0, %c0_i32 : i32, i32
  }
}

</mosaic_0001>

<bundles_post_ra>
// kernel: tpu_custom_call.1
= control target key start
LH: loop header
LB: loop body
LE: loop exit
PB: predicated region body
PF: predicated region fallthrough
CT: control target
= control target key end

     0   :  { %v330_v1 = vmov 0.0   ;;  %vm331_vm0 = vmmov 0   ;;  %vm54_vm1 = vcmask 261120   ;;  %s430_s0 = inlined_call_operand.vmem [shape: f32[16,32], index: 0, kind: input, shape index: {}]   ;;  %s431_s1 = inlined_call_operand.vmem [shape: bf16[32,64], index: 1, kind: input, shape index: {}]   ;;  %s432_s2 = inlined_call_operand.vmem [shape: f32[1,64], index: 2, kind: input, shape index: {}]   ;;  %s433_s3 = inlined_call_operand.vmem [shape: bf16[64,32], index: 3, kind: input, shape index: {}]   ;;  %s434_s4 = inlined_call_operand.vmem [shape: f32[1,32], index: 4, kind: input, shape index: {}]   ;;  %s435_s5 = inlined_call_operand.vmem [shape: f32[1,32], index: 5, kind: input, shape index: {}]   ;;  %s436_s6 = inlined_call_operand.vmem [shape: f32[1,32], index: 6, kind: input, shape index: {}]   ;;  %s437_s7 = inlined_call_operand.hbm [shape: f32[16,32], index: 7, kind: output, shape index: {}]  }
   0x1   :  { %v296_v0 = vld [vmem:[%s431_s1] sm:$0xff]   ;;  %271 = vmatprep.subr.bf16.mxu0 %v330_v1  ;;  %v297_v2 = vld [vmem:[%s431_s1 + $0x8] sm:$0xff]   ;;  %279 = vmatprep.subr.bf16.mxu1 %v330_v1 }
   0x2   :  { %272 = vmatpush3.bf16.msra.mxu0 %v296_v0  ;;  %275 = vmatprep.mubr.msk.bf16.mxu0 %vm331_vm0, %v330_v1  ;;  %v28_v3 = vld [vmem:[%s430_s0] sm:$0xff]  ;;  %v29_v4 = vld [vmem:[%s430_s0 + $0x8] sm:$0xff] }
   0x3   :  { %273 = vmatprep.subr.bf16.mxu0 %v330_v1  ;;  %v298_v5 = vld [vmem:[%s433_s3] sm:$0xff]   ;;  %287 = vmatprep.mubr.msk.bf16.mxu1 %vm331_vm0, %v330_v1  ;;  %v299_v6 = vld [vmem:[%s433_s3 + $0x8] sm:$0xff]   ;;  %v30_v7 = vpack.c.bf16 %v29_v4, %v28_v3 }
   0x4   :  { %280 = vmatpush3.bf16.msra.mxu1 %v298_v5 }
   0x5   :  { %281 = vmatprep.subr.bf16.mxu1 %v330_v1 }
   0x6   :  { %274 = vmatpush3.bf16.msra.mxu0 %v297_v2 }
   0x7   :  { %12 = vsyncpa [#allocation3], 0  ;;  %v300_v8 = vld [vmem:[%s433_s3 + $0x10] sm:$0xff]   ;;  %v301_v9 = vld [vmem:[%s433_s3 + $0x18] sm:$0xff]   ;;  %vm141_vm2 = vcmask 523264   ;;  %s332_s20 = smov [#allocation2]  }
   0x8   :  { %282 = vmatpush3.bf16.msra.mxu1 %v299_v6  ;;  %v251_v10 = vld [vmem:[%s432_s2] ss:$0 sm:$0xff]  ;;  %s240_s21 = sshll.u32 %s332_s20, 4  ;;  %s241_s21 = int_to_ptr.vmem [resolvable:$true] %s240_s21 }
   0x9   :  { %276 = vmatmul.mubr.msk.bf16.vlgmr.msra.gmra.mrb[0].mxu0 %vm54_vm1, %v30_v7  ;;  %283 = vmatprep.subr.bf16.mxu1 %v330_v1  ;;  %v255_v20 = vld [vmem:[%s434_s4] ss:$0 sm:$0xff]  ;;  %s306_s22 = scalar_lea.vmem %s241_s21, 256  ;;  %p311_p1 = scmp.lt.s32.totalorder %s241_s21, %s241_s21 }
   0xa   :  { %v261_v48 = vld [vmem:[%s435_s5] ss:$0 sm:$0xff]  ;;  %p307_p0 = scmp.ne.s32.totalorder %s241_s21, %s306_s22  ;;  %p312_p2 = scmp.lt.s32.totalorder %s306_s22, %s306_s22 }
   0xb   :  { %v262_v50 = vld [vmem:[%s436_s6] ss:$0 sm:$0xff] }
   0xc   :  { %284 = vmatpush3.bf16.msra.mxu1 %v300_v8  ;;  %p313_p3 = por %p312_p2, %p311_p1 }
   0xd   :  { %285 = vmatprep.subr.bf16.mxu1 %v330_v1 }
   0xe   :  { %p314_p4 = pnand %p313_p3, %p307_p0 }
  0x10   :  { %286 = vmatpush3.bf16.msra.mxu1 %v301_v9 }
  0xdc   :  { %v92_v11 = vpop.f32.mrb[0].mxu0 }
  0xdd   :  { %v93_v12 = vadd.f32 %v251_v10, %v92_v11  ;;  %v277_v13 = vpop.f32.mrb[1].mxu0 }
  0xde   :  { %v95_v14 = vpop.f32.mrb[2].mxu0 }
  0xdf   :  { %v96_v15 = vadd.f32 %v251_v10, %v95_v14  ;;  %v278_v16 = vpop.f32.mrb[3].mxu0  ;;  %v99_v17 = vmax.f32 %v93_v12, 0.0 }
  0xe1   :  { %v100_v18 = vmax.f32 %v96_v15, 0.0 }
  0xe3   :  { %v101_v19 = vpack.c.bf16 %v100_v18, %v99_v17 }
  0xe5   :  { %288 = vmatmul.mubr.msk.bf16.vlgmr.msra.gmra.mrb[0].mxu1 %vm141_vm2, %v101_v19 }
 0x1b8   :  { %v179_v21 = vpop.f32.mrb[0].mxu1 }
 0x1b9   :  { %v180_v22 = vadd.f32 %v255_v20, %v179_v21  ;;  %v289_v23 = vpop.f32.mrb[1].mxu1 }
 0x1ba   :  { %v182_v24 = vpop.f32.mrb[2].mxu1 }
 0x1bb   :  { %v183_v25 = vadd.f32 %v255_v20, %v182_v24  ;;  %v290_v26 = vpop.f32.mrb[3].mxu1  ;;  %v186_v27 = vadd.f32 %v180_v22, %v28_v3 }
 0x1bd   :  { %v188_v28 = vsel %vm54_vm1, %v186_v27, 0.0  ;;  %v187_v29 = vadd.f32 %v183_v25, %v29_v4 }
 0x1be   :  { %189 = vadd.xlane.f32.xlu0 %v188_v28 }
 0x1bf   :  { %v191_v30 = vsel %vm54_vm1, %v187_v29, 0.0 }
 0x1c2   :  { %192 = vadd.xlane.f32.xlu0 %v191_v30 }
 0x24b   :  { %v190_v31 = vpop.xlane.xlu0 %189 }
 0x24c   :  { %v195_v32 = vmul.f32 0.03125, %v190_v31 }
 0x24e   :  { %v197_v33 = vsub.f32 %v186_v27, %v195_v32 }
 0x24f   :  { %v193_v34 = vpop.xlane.xlu0 %192 }
 0x250   :  { %v196_v35 = vmul.f32 0.03125, %v193_v34  ;;  %v199_v36 = vmul.f32 %v197_v33, %v197_v33 }
 0x252   :  { %v198_v37 = vsub.f32 %v187_v29, %v196_v35  ;;  %v201_v38 = vsel %vm54_vm1, %v199_v36, 0.0 }
 0x253   :  { %202 = vadd.xlane.f32.xlu1 %v201_v38 }
 0x254   :  { %v200_v39 = vmul.f32 %v198_v37, %v198_v37 }
 0x256   :  { %v204_v40 = vsel %vm54_vm1, %v200_v39, 0.0 }
 0x257   :  { %205 = vadd.xlane.f32.xlu1 %v204_v40 }
 0x2e0   :  { %v203_v41 = vpop.xlane.xlu1 %202 }
 0x2e1   :  { %v207_v42 = vmul.f32 0.03125, %v203_v41 }
 0x2e3   :  { %v209_v43 = vadd.f32 1e-05, %v207_v42 }
 0x2e4   :  { %v206_v44 = vpop.xlane.xlu1 %205 }
 0x2e5   :  { %302 = vrsqrt.f32 %v209_v43  ;;  %v208_v45 = vmul.f32 0.03125, %v206_v44 }
 0x2e7   :  { %v210_v46 = vadd.f32 1e-05, %v208_v45 }
 0x2e9   :  { %304 = vrsqrt.f32 %v210_v46 }
 0x2ef   :  { %v303_v47 = vpop.eup %302 }
 0x2f0   :  { %v213_v49 = vmul.f32 %v303_v47, %v197_v33 }
 0x2f2   :  { %v222_v51 = vmul.f32 %v261_v48, %v213_v49 }
 0x2f3   :  { %v305_v52 = vpop.eup %304 }
 0x2f4   :  { %v214_v53 = vmul.f32 %v305_v52, %v198_v37  ;;  %v231_v54 = vadd.f32 %v262_v50, %v222_v51 }
 0x2f6   :  { %v223_v55 = vmul.f32 %v261_v48, %v214_v53  ;;  %233 = vst.msk [vmem:[#allocation2] sm:$0xff] %vm54_vm1, %v231_v54 }
 0x2f8   :  { %v232_v56 = vadd.f32 %v262_v50, %v223_v55 }
 0x2fa   :  { %234 = vst.msk [vmem:[#allocation2 + $0x8] sm:$0xff] %vm54_vm1, %v232_v56 }
 0x2fb   :  { %317 = shalt.err (!%p314_p4)
}
 0x2fc   :  { %s318_s23 = scalar_lea.hbm %s437_s7, 256 }
 0x2fd   :  { %p319_p5 = scmp.ne.s32.totalorder %s437_s7, %s318_s23  ;;  %p322_p6 = scmp.lt.u32.totalorder %s318_s23, %s437_s7 }
 0x2ff   :  { %p324_p7 = pnand %p322_p6, %p319_p5 }
 0x301   :  { %327 = shalt.err (!%p324_p7)
}
 0x302   :  { %s333_s28 = smov 128   ;;  %s334_s29 = smov 8  }
 0x303   :  { %246 = dma.vmem_to_hbm [thread:$0]  %s241_s21, 256, %s437_s7, [#allocation3], %s333_s28, %s333_s28, %s334_s29  }
 0x304   :  { %328 = dma.done.wait [#allocation3], 256  }
 0x305   :  { %329 = vsyncadd [#allocation3], 4294967040 }
 0x306   :  { %250 = vsyncpa [#allocation3], 1 }

</bundles_post_ra>
